<compile_context>
chip_gen: v7x
topology: tpu7x:2x2x1
jax: 0.10.0
libtpu: 0.0.40
codegen_flags: <defaults>
</compile_context>

<pallas_src>
import math

import jax
import jax.numpy as jnp
from jax.experimental import pallas as pl
from jax.experimental.pallas import tpu as pltpu


def _dotproduct1_kernel(x_ref, w_ref, o_ref):
    # x_ref: (tile_r, tile_c), w_ref: (1, tile_c) -> VPU broadcast multiply.
    o_ref[...] = x_ref[...] * w_ref[...]


def _sublane(dtype):
    # Packed sub-32-bit dtypes need 16 (bf16) / 32 (int8) row alignment.
    return max(8, 32 // jnp.dtype(dtype).itemsize)


def _mul_bcast_2d(x2, w_row, *, target_tile_bytes, max_lane_tile=2048,
                  vmem_limit_bytes=48 << 20):
    """out2[r, c] = x2[r, c] * w_row[0, c] via a 2-D cdiv grid."""
    R, C = x2.shape
    itemsize = jnp.dtype(x2.dtype).itemsize
    sublane = _sublane(x2.dtype)

    # Lane (last-dim) tile: full C when small, else a fixed 128-multiple cap.
    # With a cdiv grid only the final column block (if any) pays masked stores.
    tile_c = C if C <= max_lane_tile else max_lane_tile

    # Row tile: largest sublane-aligned count within the byte budget; the full
    # R (always a legal block dim) when the budget covers it.  A cdiv grid
    # handles any remainder with an edge-masked block -- no pad/strip passes
    # and no degenerate tiny-divisor tiles.
    budget_rows = max(
        sublane, (target_tile_bytes // (tile_c * itemsize)) // sublane * sublane)
    tile_r = R if budget_rows >= R else budget_rows

    # Columns OUTER so the weight block index is constant across row steps and
    # the weight tile stays resident in VMEM.
    grid = (pl.cdiv(C, tile_c), pl.cdiv(R, tile_r))

    return pl.pallas_call(
        _dotproduct1_kernel,
        out_shape=jax.ShapeDtypeStruct((R, C), x2.dtype),
        grid_spec=pltpu.PrefetchScalarGridSpec(
            num_scalar_prefetch=0,
            grid=grid,
            in_specs=[
                pl.BlockSpec((tile_r, tile_c), lambda j, i: (i, j)),
                pl.BlockSpec((1, tile_c), lambda j, i: (0, j)),
            ],
            out_specs=pl.BlockSpec((tile_r, tile_c), lambda j, i: (i, j)),
        ),
        compiler_params=pltpu.CompilerParams(
            # TODO(synk): on v7x verify both TensorCores are used; if not, use
            # pltpu.CORE_PARALLEL on the row axis.
            dimension_semantics=("parallel", "parallel"),
            vmem_limit_bytes=vmem_limit_bytes,
        ),
        cost_estimate=pl.CostEstimate(
            flops=R * C,
            transcendentals=0,
            bytes_accessed=2 * R * C * itemsize + C * itemsize,
        ),
    )(x2, w_row)


def dotproduct1(x, weight, *, target_tile_bytes=6 << 20):
    """out = x * weight, weight broadcast over leading dims (x.shape[-1] == F)."""
    F = int(weight.shape[0])
    assert x.shape[-1] == F, "last dim of input must equal in_features"
    orig_shape = x.shape
    dtype = x.dtype
    w = weight.astype(dtype)
    B = math.prod(orig_shape) // F

    if F % 128 == 0:
        # Already lane-dense: simple (B, F) view.
        out2 = _mul_bcast_2d(x.reshape(B, F), w.reshape(1, F),
                             target_tile_bytes=target_tile_bytes)
        return out2.reshape(orig_shape)

    # 128-unaligned feature dim: flatten k = lcm(F,128)//F original rows into
    # one lane-dense row of C = lcm(F,128) lanes; tile the weight k times.
    k = 128 // math.gcd(F, 128)
    C = F * k
    x2 = x.reshape(B, F)

    if B < k:
        # Tiny input: single narrow-lane block (masked stores, negligible).
        return _mul_bcast_2d(
            x2, w.reshape(1, F),
            target_tile_bytes=target_tile_bytes).reshape(orig_shape)

    w_row = jnp.tile(w, k).reshape(1, C)
    B_bulk = (B // k) * k
    bulk = _mul_bcast_2d(
        x2[:B_bulk].reshape(B_bulk // k, C), w_row,
        target_tile_bytes=target_tile_bytes).reshape(B_bulk, F)
    if B_bulk == B:
        return bulk.reshape(orig_shape)
    # < k leftover rows: tiny plain-XLA multiply instead of forcing the whole
    # tensor through a masked-store (narrow-lane) Pallas path.
    rem = x2[B_bulk:] * w[None, :]
    return jnp.concatenate([bulk, rem], axis=0).reshape(orig_shape)


if __name__ == "__main__":
    key = jax.random.PRNGKey(0)
    k_x, k_w = jax.random.split(key)

    # Canonical small demo, mirroring the PyTorch module's init.
    batch, in_features = 8, 32
    stdv = 1.0 / math.sqrt(in_features)
    x = jax.random.normal(k_x, (batch, in_features), dtype=jnp.float32)
    weight = jax.random.uniform(
        k_w, (in_features,), dtype=jnp.float32, minval=-stdv, maxval=stdv)

    out = jax.block_until_ready(dotproduct1(x, weight))
    ref = x * weight[None, :]
    assert out.shape == x.shape
    assert jnp.allclose(out, ref, atol=1e-6, rtol=1e-6), "mismatch vs reference"

    # Extra tiny cases exercising every tiling path of the wrapper.
    cases = [
        ((2, 4, 256), jnp.float32, None),   # F % 128 == 0, 3-D input
        ((3, 7, 32), jnp.float32, None),    # bulk lane-dense + 1-row remainder
        ((2, 96), jnp.float32, None),       # B < k: narrow-lane tiny fallback
        ((64, 128), jnp.float32, 4096),     # multi-step row grid
        ((20, 128), jnp.float32, 4096),     # cdiv row grid, edge-masked block
        ((8, 4096), jnp.float32, None),     # column-tiled feature axis
        ((4, 2304), jnp.float32, None),     # cdiv column grid, edge col block
        ((64, 128), jnp.bfloat16, 4096),    # bf16: 16-row sublane alignment
    ]
    for i, (shape, dt, tb) in enumerate(cases):
        kx, kw = jax.random.split(jax.random.fold_in(key, i + 1))
        f = shape[-1]
        xc = jax.random.normal(kx, shape, dtype=jnp.float32).astype(dt)
        wc = jax.random.uniform(
            kw, (f,), dtype=jnp.float32,
            minval=-1.0 / math.sqrt(f), maxval=1.0 / math.sqrt(f)).astype(dt)
        kwargs = {} if tb is None else {"target_tile_bytes": tb}
        got = jax.block_until_ready(dotproduct1(xc, wc, **kwargs))
        want = xc * wc.reshape((1,) * (len(shape) - 1) + (f,))
        tol = 1e-6 if dt == jnp.float32 else 1e-2
        assert got.shape == xc.shape
        assert jnp.allclose(got.astype(jnp.float32), want.astype(jnp.float32),
                            atol=tol, rtol=tol), f"mismatch in case {i}: {shape} {dt}"

    print("KERNEL_OK")
</pallas_src>

<mosaic_0001>
module attributes {stable_mosaic.version = 11 : i64} {
  func.func @_dotproduct1_kernel(%arg0: i32, %arg1: i32, %arg2: memref<2x128xf32, #tpu.memory_space<vmem>>, %arg3: memref<1x128xf32, #tpu.memory_space<vmem>>, %arg4: memref<2x128xf32, #tpu.memory_space<vmem>>) attributes {dimension_semantics = [#tpu.dimension_semantics<parallel>, #tpu.dimension_semantics<parallel>], iteration_bounds = array<i64: 1, 1>, scalar_prefetch = 0 : i64, scratch_operands = 0 : i64, tpu.core_type = #tpu.core_type<tc>, window_params = [{transform_indices = @transform_0, window_bounds = array<i64: 2, 128>}, {transform_indices = @transform_1, window_bounds = array<i64: 1, 128>}, {transform_indices = @transform_2, window_bounds = array<i64: 2, 128>}]} {
    %c0 = arith.constant 0 : index
    %c0_0 = arith.constant 0 : index
    %0 = vector.load %arg2[%c0, %c0_0] : memref<2x128xf32, #tpu.memory_space<vmem>>, vector<2x128xf32>
    %c0_1 = arith.constant 0 : index
    %c0_2 = arith.constant 0 : index
    %1 = vector.load %arg3[%c0_1, %c0_2] : memref<1x128xf32, #tpu.memory_space<vmem>>, vector<1x128xf32>
    %2 = vector.broadcast %1 : vector<1x128xf32> to vector<2x128xf32>
    %3 = arith.mulf %0, %2 : vector<2x128xf32>
    %c0_3 = arith.constant 0 : index
    %c0_4 = arith.constant 0 : index
    %4 = vector.load %arg4[%c0_3, %c0_4] : memref<2x128xf32, #tpu.memory_space<vmem>>, vector<2x128xf32>
    tpu.vector_store %arg4[%c0_3, %c0_4], %3 {strides = array<i32>} : memref<2x128xf32, #tpu.memory_space<vmem>>, vector<2x128xf32>,
    return
  }
  func.func @transform_0(%arg0: i32, %arg1: i32) -> (i32, i32) {
    %c0_i32 = arith.constant 0 : i32
    return %arg1, %arg0 : i32, i32
  }
  func.func @transform_1(%arg0: i32, %arg1: i32) -> (i32, i32) {
    %c0_i32 = arith.constant 0 : i32
    %c0_i32_0 = arith.constant 0 : i32
    return %c0_i32, %arg0 : i32, i32
  }
  func.func @transform_2(%arg0: i32, %arg1: i32) -> (i32, i32) {
    %c0_i32 = arith.constant 0 : i32
    return %arg1, %arg0 : i32, i32
  }
}

</mosaic_0001>

<bundles_post_ra>
// kernel: tpu_custom_call.1
= control target key start
LH: loop header
LB: loop body
LE: loop exit
PB: predicated region body
PF: predicated region fallthrough
CT: control target
= control target key end

     0   :  { %7 = vsyncpa [#allocation3], 0  ;;  %s144_s0 = inlined_call_operand.hbm [shape: f32[2,128], index: 0, kind: input, shape index: {}]   ;;  %s145_s1 = inlined_call_operand.vmem [shape: f32[1,128], index: 1, kind: input, shape index: {}]   ;;  %s146_s2 = inlined_call_operand.hbm [shape: f32[2,128], index: 2, kind: output, shape index: {}]  }
   0x1   :  { %8 = vsyncpa [#allocation4], 0  ;;  %s100_s9 = smov [#allocation2]   ;;  %s52_s13 = scalar_lea.hbm %s144_s0, 32 }
   0x2   :  { %s15_s10 = sshll.u32 %s100_s9, 4  ;;  %p53_p0 = scmp.ne.s32.totalorder %s144_s0, %s52_s13  ;;  %s16_s10 = int_to_ptr.vmem [resolvable:$true] %s15_s10 }
   0x3   :  { %p56_p1 = scmp.lt.u32.totalorder %s52_s13, %s144_s0 }
   0x5   :  { %p58_p2 = pnand %p56_p1, %p53_p0 }
   0x7   :  { %61 = shalt.err (!%p58_p2)
}
   0x8   :  { %s62_s18 = scalar_lea.vmem %s16_s10, 32  ;;  %p67_p4 = scmp.lt.s32.totalorder %s16_s10, %s16_s10 }
   0x9   :  { %p63_p3 = scmp.ne.s32.totalorder %s16_s10, %s62_s18  ;;  %p68_p5 = scmp.lt.s32.totalorder %s62_s18, %s62_s18 }
   0xb   :  { %p69_p6 = por %p68_p5, %p67_p4 }
   0xd   :  { %p70_p7 = pnand %p69_p6, %p63_p3 }
   0xf   :  { %73 = shalt.err (!%p70_p7)
}
  0x10   :  { %18 = dma.hbm_to_vmem [thread:$0]  %s144_s0, 32, %s16_s10, [#allocation3]  }
  0x11   :  { %96 = dma.done.wait [#allocation3], 32  }
  0x12   :  { %97 = vsyncadd [#allocation3], 4294967264  ;;  %s101_s21 = smov [#allocation5]   ;;  %v24_v0 = vld [vmem:[#allocation2] sm:$0x3] }
  0x13   :  { %s40_s22 = sshll.u32 %s101_s21, 4  ;;  %v49_v1 = vld [vmem:[%s145_s1] ss:$0 sm:$0xff]  ;;  %s41_s22 = int_to_ptr.vmem [resolvable:$true] %s40_s22 }
  0x14   :  { %v32_v2 = vmul.f32 %v49_v1, %v24_v0  ;;  %s74_s25 = scalar_lea.vmem %s41_s22, 32  ;;  %p79_p9 = scmp.lt.s32.totalorder %s41_s22, %s41_s22 }
  0x15   :  { %p75_p8 = scmp.ne.s32.totalorder %s41_s22, %s74_s25  ;;  %p80_p10 = scmp.lt.s32.totalorder %s74_s25, %s74_s25 }
  0x16   :  { %33 = vst [vmem:[#allocation5] sm:$0x3] %v32_v2 }
  0x17   :  { %p81_p11 = por %p80_p10, %p79_p9 }
  0x19   :  { %p82_p12 = pnand %p81_p11, %p75_p8 }
  0x1b   :  { %85 = shalt.err (!%p82_p12)
}
  0x1c   :  { %s86_s27 = scalar_lea.hbm %s146_s2, 32 }
  0x1d   :  { %p87_p13 = scmp.ne.s32.totalorder %s146_s2, %s86_s27  ;;  %p90_p0 = scmp.lt.u32.totalorder %s86_s27, %s146_s2 }
  0x1f   :  { %p92_p1 = pnand %p90_p0, %p87_p13 }
  0x21   :  { %95 = shalt.err (!%p92_p1)
}
  0x22   :  { %43 = dma.vmem_to_hbm [thread:$0]  %s41_s22, 32, %s146_s2, [#allocation4]  }
  0x23   :  { %98 = dma.done.wait [#allocation4], 32  }
  0x24   :  { %99 = vsyncadd [#allocation4], 4294967264 }
  0x25   :  { %47 = vsyncpa [#allocation3], 1 }
  0x26   :  { %48 = vsyncpa [#allocation4], 1 }

</bundles_post_ra>
